<compile_context>
chip_gen: v5e
topology: v5e:2x2
jax: 0.10.0
libtpu: 0.0.40
codegen_flags: <defaults>
</compile_context>

<pallas_src>
import functools

import jax
import jax.numpy as jnp
from jax.experimental import pallas as pl
from jax.experimental.pallas import tpu as pltpu


def _vq_kernel(emb_ref, embt_ref, esqr_ref, x_ref, q_ref, stats_ref,
               *, split, valid_last, has_pad):
    """Quantize one (D, tile) column tile of one (batch, outer-T) slice.

    emb_ref:   (K+K1, D)      block-diagonal [[emb1, 0], [0, emb2]]
    embt_ref:  (D, K+K1)      its transpose (precomputed, no in-kernel XLU)
    esqr_ref:  (K+K1, 1)      0.5 * ||code||^2 per row (precomputed)
    x_ref:     (1, D, tile)   input tile: channels on sublanes, time on lanes
    q_ref:     (1, D, tile)   quantized output tile (lane-dense store)
    stats_ref: (1, K+K1+1, 1) resident accumulator: rows [0, K+K1) = code
                              usage counts, last row = sum of squared errors
    """
    t_idx = pl.program_id(2)

    x = x_ref[0]                                                       # (D, tile)

    # Fused distances for both halves with a single MXU push.  Rows [0, K)
    # see only channels [0, D/2) (codebook 1), rows [K, K+K1) only channels
    # [D/2, D) (codebook 2) thanks to the block-diagonal layout.  ||x||^2 is
    # argmin-invariant and dropped; dist' = 0.5*||e||^2 - e.x.
    ex = jnp.dot(emb_ref[...], x, preferred_element_type=jnp.float32)  # (KK, tile)
    dist = esqr_ref[...] - ex                                          # (KK, tile)

    kk, tile = dist.shape
    row_iota = jax.lax.broadcasted_iota(jnp.int32, (kk, tile), 0)

    # Per-half argmin with first-index tie-breaking (matches torch.argmax(-d)).
    d1, d2 = dist[:split, :], dist[split:, :]
    m1 = jnp.min(d1, axis=0, keepdims=True)                            # (1, tile)
    m2 = jnp.min(d2, axis=0, keepdims=True)
    idx1 = jnp.min(jnp.where(d1 <= m1, row_iota[:split, :], kk),
                   axis=0, keepdims=True)                              # in [0, K)
    idx2 = jnp.min(jnp.where(d2 <= m2, row_iota[split:, :], kk),
                   axis=0, keepdims=True)                              # in [K, KK)
    onehot = jnp.logical_or(row_iota == idx1,
                            row_iota == idx2).astype(jnp.float32)      # (KK, tile)

    # Both halves of the quantized tile with one MXU push; contiguous store.
    quant = jnp.dot(embt_ref[...], onehot, preferred_element_type=jnp.float32)
    q_ref[0] = quant.astype(q_ref.dtype)

    # Interior tiles accumulate UNMASKED; padding is corrected on the last
    # tile only (see below).
    counts = jnp.sum(onehot, axis=1, keepdims=True)                    # (KK, 1)
    diff = quant - x
    err = jnp.sum(diff * diff).reshape(1, 1)

    @pl.when(t_idx == 0)
    def _():
        stats_ref[...] = jnp.zeros_like(stats_ref)

    stats_ref[...] += jnp.concatenate([counts, err], axis=0)[None]

    if has_pad:
        # Only the globally-last time tile carries zero padding; subtract its
        # contribution there instead of masking every interior grid step.
        is_last = jnp.logical_and(pl.program_id(1) == pl.num_programs(1) - 1,
                                  t_idx == pl.num_programs(2) - 1)

        @pl.when(is_last)
        def _():
            col = jax.lax.broadcasted_iota(jnp.int32, (1, tile), 1)
            invalid = col >= valid_last
            pad_counts = jnp.sum(jnp.where(invalid, onehot, 0.0),
                                 axis=1, keepdims=True)
            pad_err = jnp.sum(jnp.where(invalid, diff * diff, 0.0)).reshape(1, 1)
            stats_ref[...] -= jnp.concatenate([pad_counts, pad_err], axis=0)[None]


def _default_tile_t():
    """Per-generation time-tile default (static, trace-time only)."""
    # v7x (64 MiB VMEM, ~3.2 TB/s HBM) needs larger tiles to amortize the
    # fixed per-grid-step overhead; v5e/v6e are comfortable at 4096 columns.
    try:
        info = pltpu.get_tpu_info()
        if getattr(info, "vmem_capacity_bytes", 128 * 1024 * 1024) <= 64 * 1024 * 1024:
            return 8192
    except Exception:
        pass
    return 4096


@functools.partial(jax.jit, static_argnames=("beta", "tile_t"))
def sliced_vector_quantize(x, emb1, emb2, beta=0.25, tile_t=None):
    """Forward pass of SlicedVectorQuantize.

    x:    (B, D, T) float32  -- channels-first, like the PyTorch module input
    emb1: (K,  D//2) float32
    emb2: (K1, D//2) float32
    Returns (quant (B, D, T), vq_loss scalar, perplexity scalar).
    """
    B, D, T = x.shape
    sub_d = D // 2
    assert D == 2 * sub_d, "SlicedVectorQuantize with n_d=2 requires even D"
    K, K1 = emb1.shape[0], emb2.shape[0]
    KK = K + K1
    N = B * T

    if tile_t is None:
        tile_t = _default_tile_t()

    emb1 = emb1.astype(jnp.float32)
    emb2 = emb2.astype(jnp.float32)

    # ---- hoisted, grid-invariant codebook tensors ---------------------------
    emb_blk = jnp.concatenate(
        [jnp.concatenate([emb1, jnp.zeros((K, sub_d), jnp.float32)], axis=1),
         jnp.concatenate([jnp.zeros((K1, sub_d), jnp.float32), emb2], axis=1)],
        axis=0)                                                        # (KK, D)
    emb_blk_t = emb_blk.T                                              # (D, KK)
    half_esqr = 0.5 * jnp.concatenate(
        [jnp.sum(emb1 * emb1, axis=1),
         jnp.sum(emb2 * emb2, axis=1)])[:, None]                       # (KK, 1)

    # ---- small-T path: fold batch into the lane (time) axis -----------------
    fold = T < 128
    if fold:
        x_work = jnp.transpose(x, (1, 0, 2)).reshape(1, D, B * T)
        b_eff, t_eff = 1, B * T
    else:
        x_work = x
        b_eff, t_eff = B, T
    x_work = x_work.astype(jnp.float32)

    # ---- time tiling ---------------------------------------------------------
    if t_eff <= tile_t:
        tile = t_eff
    else:
        tile = max(128, (tile_t // 128) * 128)
    n_t = -(-t_eff // tile)
    t_pad = n_t * tile
    has_pad = t_pad != t_eff
    valid_last = t_eff - (n_t - 1) * tile
    if has_pad:
        x_work = jnp.pad(x_work, ((0, 0), (0, 0), (0, t_pad - t_eff)))

    # ---- optional parallel outer split of T (keeps both v7x TensorCores busy
    #      when the batch axis alone cannot) ----------------------------------
    n_outer = 2 if (b_eff == 1 and n_t >= 2 and n_t % 2 == 0) else 1
    n_inner = n_t // n_outer

    kernel = functools.partial(_vq_kernel, split=K,
                               valid_last=valid_last, has_pad=has_pad)

    quant, stats = pl.pallas_call(
        kernel,
        out_shape=(
            jax.ShapeDtypeStruct((b_eff, D, t_pad), jnp.float32),
            jax.ShapeDtypeStruct((b_eff * n_outer, KK + 1, 1), jnp.float32),
        ),
        grid_spec=pltpu.PrefetchScalarGridSpec(
            num_scalar_prefetch=0,
            grid=(b_eff, n_outer, n_inner),
            in_specs=[
                pl.BlockSpec((KK, D), lambda b, o, i: (0, 0)),
                pl.BlockSpec((D, KK), lambda b, o, i: (0, 0)),
                pl.BlockSpec((KK, 1), lambda b, o, i: (0, 0)),
                pl.BlockSpec((1, D, tile),
                             lambda b, o, i: (b, 0, o * n_inner + i)),
            ],
            out_specs=[
                pl.BlockSpec((1, D, tile),
                             lambda b, o, i: (b, 0, o * n_inner + i)),
                pl.BlockSpec((1, KK + 1, 1),
                             lambda b, o, i: (b * n_outer + o, 0, 0)),
            ],
        ),
        compiler_params=pltpu.CompilerParams(
            dimension_semantics=("parallel", "parallel", "arbitrary"),
            vmem_limit_bytes=32 * 1024 * 1024,
        ),
    )(emb_blk, emb_blk_t, half_esqr, x_work)

    if has_pad:
        quant = quant[:, :, :t_eff]
    if fold:
        quant = quant[0].reshape(D, B, T).transpose(1, 0, 2)
    # NOTE: quant is kept in f32 to match the module exactly; emitting bf16
    # here is a valid ~25% HBM-traffic cut on v5e/v6e if downstream allows it.

    stats_sum = jnp.sum(stats[:, :, 0], axis=0)                        # (KK+1,)
    counts = stats_sum[:KK]
    err = stats_sum[KK]

    # vq_loss forward value = mean((quant - x)^2) * (1 + beta).
    # TODO(synk): straight-through / detach gradient semantics are a
    # training-time autodiff construct; forward values are identical.
    mse = err / (N * D)
    vq_loss = (1.0 + beta) * mse

    avg1 = counts[:K] / N
    avg2 = counts[K:] / N
    perp = (jnp.exp(-jnp.sum(avg1 * jnp.log(avg1 + 1e-10)))
            + jnp.exp(-jnp.sum(avg2 * jnp.log(avg2 + 1e-10))))

    return quant, vq_loss, perp


def _reference_forward(x, emb1, emb2, beta):
    """Pure-JAX reference mirroring the PyTorch module's forward values."""
    B, D, T = x.shape
    sub_d = D // 2
    flat = jnp.transpose(x, (0, 2, 1)).reshape(-1, D)

    def half(f, e):
        d = (jnp.sum(f ** 2, axis=1, keepdims=True)
             + jnp.sum(e ** 2, axis=1)[None, :]
             - 2.0 * f @ e.T)
        idx = jnp.argmin(d, axis=1)
        onehot = jax.nn.one_hot(idx, e.shape[0], dtype=jnp.float32)
        return onehot @ e, onehot

    q1, oh1 = half(flat[:, :sub_d], emb1)
    q2, oh2 = half(flat[:, sub_d:], emb2)
    quant = jnp.concatenate([q1, q2], axis=1)
    mse = jnp.mean((quant - flat) ** 2)
    vq_loss = mse + beta * mse
    ap1 = jnp.mean(oh1, axis=0)
    ap2 = jnp.mean(oh2, axis=0)
    perp = (jnp.exp(-jnp.sum(ap1 * jnp.log(ap1 + 1e-10)))
            + jnp.exp(-jnp.sum(ap2 * jnp.log(ap2 + 1e-10))))
    quant_out = jnp.transpose(quant.reshape(B, T, D), (0, 2, 1))
    return quant_out, vq_loss, perp


if __name__ == "__main__":
    # Module hyperparameters (small, consistent with the reference __init__).
    K = 16          # codebook 1 size
    K1 = 16         # codebook 2 size
    D = 32          # channel dim
    beta = 0.25
    sub_d = D // 2

    key = jax.random.PRNGKey(0)
    kx, k1, k2, kx2, kx3 = jax.random.split(key, 5)

    # nn.Embedding.weight.data.uniform_(-1/K, 1/K)
    emb1 = jax.random.uniform(k1, (K, sub_d), jnp.float32,
                              minval=-1.0 / K, maxval=1.0 / K)
    emb2 = jax.random.uniform(k2, (K1, sub_d), jnp.float32,
                              minval=-1.0 / K1, maxval=1.0 / K1)

    # 1) Small-T smoke test in PyTorch layout (B, C=D, T): exercises the
    #    batch->lane fold path (T < 128 -> one grid step on a (D, B*T) slab).
    B, T = 2, 8
    x = jax.random.normal(kx, (B, D, T), jnp.float32)
    quant, vq_loss, perp = sliced_vector_quantize(x, emb1, emb2, beta=beta)
    jax.block_until_ready((quant, vq_loss, perp))
    assert quant.shape == (B, D, T)
    assert vq_loss.shape == ()
    assert perp.shape == ()
    q_r, l_r, p_r = _reference_forward(x, emb1, emb2, beta)
    assert float(jnp.mean(jnp.abs(quant - q_r))) < 1e-3
    assert abs(float(vq_loss) - float(l_r)) < 1e-3 * max(1.0, abs(float(l_r)))
    assert abs(float(perp) - float(p_r)) < 0.25

    # 2) Multi-tile ragged-T path (zero-pad + last-tile-only correction) with
    #    the batch axis on the parallel grid dimension.
    B2, T2 = 2, 300
    x2 = jax.random.normal(kx2, (B2, D, T2), jnp.float32)
    q_k, l_k, p_k = sliced_vector_quantize(x2, emb1, emb2, beta=beta, tile_t=128)
    jax.block_until_ready((q_k, l_k, p_k))
    assert q_k.shape == (B2, D, T2)
    q_r2, l_r2, p_r2 = _reference_forward(x2, emb1, emb2, beta)
    assert float(jnp.mean(jnp.abs(q_k - q_r2))) < 1e-3
    assert abs(float(l_k) - float(l_r2)) < 1e-3 * max(1.0, abs(float(l_r2)))
    assert abs(float(p_k) - float(p_r2)) < 0.25

    # 3) B == 1: exercises the parallel outer-T split (n_outer = 2) together
    #    with ragged-T padding correction.
    B3, T3 = 1, 700
    x3 = jax.random.normal(kx3, (B3, D, T3), jnp.float32)
    q_k3, l_k3, p_k3 = sliced_vector_quantize(x3, emb1, emb2, beta=beta, tile_t=128)
    jax.block_until_ready((q_k3, l_k3, p_k3))
    assert q_k3.shape == (B3, D, T3)
    q_r3, l_r3, p_r3 = _reference_forward(x3, emb1, emb2, beta)
    assert float(jnp.mean(jnp.abs(q_k3 - q_r3))) < 1e-3
    assert abs(float(l_k3) - float(l_r3)) < 1e-3 * max(1.0, abs(float(l_r3)))
    assert abs(float(p_k3) - float(p_r3)) < 0.25

    print("KERNEL_OK")
</pallas_src>

<mosaic_0001>
module attributes {stable_mosaic.version = 11 : i64} {
  func.func @_vq_kernel(%arg0: i32, %arg1: i32, %arg2: i32, %arg3: memref<32x32xf32, #tpu.memory_space<vmem>>, %arg4: memref<32x32xf32, #tpu.memory_space<vmem>>, %arg5: memref<32x1xf32, #tpu.memory_space<vmem>>, %arg6: memref<1x32x16xf32, #tpu.memory_space<vmem>>, %arg7: memref<1x32x16xf32, #tpu.memory_space<vmem>>, %arg8: memref<1x33x1xf32, #tpu.memory_space<vmem>>) attributes {dimension_semantics = [#tpu.dimension_semantics<parallel>, #tpu.dimension_semantics<parallel>, #tpu.dimension_semantics<arbitrary>], iteration_bounds = array<i64: 1, 1, 1>, scalar_prefetch = 0 : i64, scratch_operands = 0 : i64, tpu.core_type = #tpu.core_type<tc>, window_params = [{pipeline_mode = #tpu.pipeline_mode<synchronous>, transform_indices = @transform_0, window_bounds = array<i64: 32, 32>}, {pipeline_mode = #tpu.pipeline_mode<synchronous>, transform_indices = @transform_1, window_bounds = array<i64: 32, 32>}, {pipeline_mode = #tpu.pipeline_mode<synchronous>, transform_indices = @transform_2, window_bounds = array<i64: 32, 1>}, {transform_indices = @transform_3, window_bounds = array<i64: 1, 32, 16>}, {transform_indices = @transform_4, window_bounds = array<i64: 1, 32, 16>}, {transform_indices = @transform_5, window_bounds = array<i64: 1, 33, 1>}]} {
    %c0 = arith.constant 0 : index
    %c0_0 = arith.constant 0 : index
    %c0_1 = arith.constant 0 : index
    %0 = vector.load %arg6[%c0, %c0_0, %c0_1] : memref<1x32x16xf32, #tpu.memory_space<vmem>>, vector<1x32x16xf32>
    %1 = vector.shape_cast %0 : vector<1x32x16xf32> to vector<32x16xf32>
    %c0_2 = arith.constant 0 : index
    %c0_3 = arith.constant 0 : index
    %2 = vector.load %arg3[%c0_2, %c0_3] : memref<32x32xf32, #tpu.memory_space<vmem>>, vector<32x32xf32>
    %cst = arith.constant dense<0.000000e+00> : vector<32x16xf32>
    %3 = tpu.matmul %2, %1, %cst {dimension_numbers = #tpu.dot_dimension_numbers<[1], [0], [0], [1], [0, 0, 1, 1], [], []>} : vector<32x32xf32>, vector<32x16xf32>, vector<32x16xf32> -> vector<32x16xf32>
    %c0_4 = arith.constant 0 : index
    %c0_5 = arith.constant 0 : index
    %4 = vector.load %arg5[%c0_4, %c0_5] : memref<32x1xf32, #tpu.memory_space<vmem>>, vector<32x1xf32>
    %5 = vector.broadcast %4 : vector<32x1xf32> to vector<32x16xf32>
    %6 = arith.subf %5, %3 : vector<32x16xf32>
    %7 = tpu.iota {dimensions = array<i32: 0>} : vector<32x16xi32>
    %8 = vector.extract_strided_slice %6 {offsets = [0, 0], sizes = [16, 16], strides = [1, 1]} : vector<32x16xf32> to vector<16x16xf32>
    %9 = vector.extract_strided_slice %6 {offsets = [16, 0], sizes = [16, 16], strides = [1, 1]} : vector<32x16xf32> to vector<16x16xf32>
    %cst_6 = arith.constant dense<0x7F800000> : vector<16xf32>
    %10 = vector.multi_reduction <minimumf>, %8, %cst_6 [0] : vector<16x16xf32> to vector<16xf32>
    %11 = vector.shape_cast %10 : vector<16xf32> to vector<1x16xf32>
    %cst_7 = arith.constant dense<0x7F800000> : vector<16xf32>
    %12 = vector.multi_reduction <minimumf>, %9, %cst_7 [0] : vector<16x16xf32> to vector<16xf32>
    %13 = vector.shape_cast %12 : vector<16xf32> to vector<1x16xf32>
    %14 = vector.broadcast %11 : vector<1x16xf32> to vector<16x16xf32>
    %15 = arith.cmpf ole, %8, %14 : vector<16x16xf32>
    %16 = vector.extract_strided_slice %7 {offsets = [0, 0], sizes = [16, 16], strides = [1, 1]} : vector<32x16xi32> to vector<16x16xi32>
    %c32_i32 = arith.constant 32 : i32
    %17 = vector.broadcast %c32_i32 : i32 to vector<16x16xi32>
    %18 = arith.select %15, %16, %17 : vector<16x16xi1>, vector<16x16xi32>
    %cst_8 = arith.constant dense<2147483647> : vector<16xi32>
    %19 = vector.multi_reduction <minsi>, %18, %cst_8 [0] : vector<16x16xi32> to vector<16xi32>
    %20 = vector.shape_cast %19 : vector<16xi32> to vector<1x16xi32>
    %21 = vector.broadcast %13 : vector<1x16xf32> to vector<16x16xf32>
    %22 = arith.cmpf ole, %9, %21 : vector<16x16xf32>
    %23 = vector.extract_strided_slice %7 {offsets = [16, 0], sizes = [16, 16], strides = [1, 1]} : vector<32x16xi32> to vector<16x16xi32>
    %c32_i32_9 = arith.constant 32 : i32
    %24 = vector.broadcast %c32_i32_9 : i32 to vector<16x16xi32>
    %25 = arith.select %22, %23, %24 : vector<16x16xi1>, vector<16x16xi32>
    %cst_10 = arith.constant dense<2147483647> : vector<16xi32>
    %26 = vector.multi_reduction <minsi>, %25, %cst_10 [0] : vector<16x16xi32> to vector<16xi32>
    %27 = vector.shape_cast %26 : vector<16xi32> to vector<1x16xi32>
    %28 = vector.broadcast %20 : vector<1x16xi32> to vector<32x16xi32>
    %29 = arith.cmpi eq, %7, %28 : vector<32x16xi32>
    %30 = vector.broadcast %27 : vector<1x16xi32> to vector<32x16xi32>
    %31 = arith.cmpi eq, %7, %30 : vector<32x16xi32>
    %32 = arith.ori %29, %31 : vector<32x16xi1>
    %33 = arith.extui %32 : vector<32x16xi1> to vector<32x16xi32>
    %34 = arith.sitofp %33 : vector<32x16xi32> to vector<32x16xf32>
    %c0_11 = arith.constant 0 : index
    %c0_12 = arith.constant 0 : index
    %35 = vector.load %arg4[%c0_11, %c0_12] : memref<32x32xf32, #tpu.memory_space<vmem>>, vector<32x32xf32>
    %cst_13 = arith.constant dense<0.000000e+00> : vector<32x16xf32>
    %36 = tpu.matmul %35, %34, %cst_13 {dimension_numbers = #tpu.dot_dimension_numbers<[1], [0], [0], [1], [0, 0, 1, 1], [], []>} : vector<32x32xf32>, vector<32x16xf32>, vector<32x16xf32> -> vector<32x16xf32>
    %c0_14 = arith.constant 0 : index
    %c0_15 = arith.constant 0 : index
    %c0_16 = arith.constant 0 : index
    %37 = vector.load %arg7[%c0_14, %c0_15, %c0_16] : memref<1x32x16xf32, #tpu.memory_space<vmem>>, vector<1x32x16xf32>
    %38 = vector.shape_cast %37 : vector<1x32x16xf32> to vector<32x16xf32>
    %39 = vector.shape_cast %36 : vector<32x16xf32> to vector<1x32x16xf32>
    tpu.vector_store %arg7[%c0_14, %c0_15, %c0_16], %39 {strides = array<i32>} : memref<1x32x16xf32, #tpu.memory_space<vmem>>, vector<1x32x16xf32>,
    %cst_17 = arith.constant dense<0.000000e+00> : vector<32xf32>
    %40 = vector.multi_reduction <add>, %34, %cst_17 [1] : vector<32x16xf32> to vector<32xf32>
    %41 = vector.shape_cast %40 : vector<32xf32> to vector<32x1xf32>
    %42 = arith.subf %36, %1 : vector<32x16xf32>
    %43 = arith.mulf %42, %42 : vector<32x16xf32>
    %44 = vector.shape_cast %43 : vector<32x16xf32> to vector<1x32x16xf32>
    %cst_18 = arith.constant dense<0.000000e+00> : vector<1xf32>
    %45 = vector.multi_reduction <add>, %44, %cst_18 [1, 2] : vector<1x32x16xf32> to vector<1xf32>
    %46 = vector.shape_cast %45 : vector<1xf32> to vector<1x1x1xf32>
    %47 = vector.extract %46[0, 0, 0] : f32 from vector<1x1x1xf32>
    %48 = vector.broadcast %47 : f32 to vector<1x1xf32>
    %c0_i32 = arith.constant 0 : i32
    %49 = arith.cmpi eq, %arg2, %c0_i32 : i32
    %50 = arith.extui %49 : i1 to i32
    %c0_i32_19 = arith.constant 0 : i32
    %51 = arith.cmpi ne, %50, %c0_i32_19 : i32
    scf.if %51 {
      %cst_26 = arith.constant 0.000000e+00 : f32
      %57 = vector.broadcast %cst_26 : f32 to vector<1x33x1xf32>
      %c0_27 = arith.constant 0 : index
      %c0_28 = arith.constant 0 : index
      %c0_29 = arith.constant 0 : index
      %58 = vector.load %arg8[%c0_27, %c0_28, %c0_29] : memref<1x33x1xf32, #tpu.memory_space<vmem>>, vector<1x33x1xf32>
      tpu.vector_store %arg8[%c0_27, %c0_28, %c0_29], %57 {strides = array<i32>} : memref<1x33x1xf32, #tpu.memory_space<vmem>>, vector<1x33x1xf32>,
    } else {
    }
    %c0_20 = arith.constant 0 : index
    %c0_21 = arith.constant 0 : index
    %c0_22 = arith.constant 0 : index
    %52 = vector.load %arg8[%c0_20, %c0_21, %c0_22] : memref<1x33x1xf32, #tpu.memory_space<vmem>>, vector<1x33x1xf32>
    %53 = tpu.concatenate %41, %48 in 0 : vector<32x1xf32>, vector<1x1xf32> -> vector<33x1xf32>
    %54 = vector.shape_cast %53 : vector<33x1xf32> to vector<1x33x1xf32>
    %55 = arith.addf %52, %54 : vector<1x33x1xf32>
    %c0_23 = arith.constant 0 : index
    %c0_24 = arith.constant 0 : index
    %c0_25 = arith.constant 0 : index
    %56 = vector.load %arg8[%c0_23, %c0_24, %c0_25] : memref<1x33x1xf32, #tpu.memory_space<vmem>>, vector<1x33x1xf32>
    tpu.vector_store %arg8[%c0_23, %c0_24, %c0_25], %55 {strides = array<i32>} : memref<1x33x1xf32, #tpu.memory_space<vmem>>, vector<1x33x1xf32>,
    return
  }
  func.func @transform_0(%arg0: i32, %arg1: i32, %arg2: i32) -> (i32, i32) {
    %c0_i32 = arith.constant 0 : i32
    %c0_i32_0 = arith.constant 0 : i32
    %c0_i32_1 = arith.constant 0 : i32
    return %c0_i32, %c0_i32_0 : i32, i32
  }
  func.func @transform_1(%arg0: i32, %arg1: i32, %arg2: i32) -> (i32, i32) {
    %c0_i32 = arith.constant 0 : i32
    %c0_i32_0 = arith.constant 0 : i32
    %c0_i32_1 = arith.constant 0 : i32
    return %c0_i32, %c0_i32_0 : i32, i32
  }
  func.func @transform_2(%arg0: i32, %arg1: i32, %arg2: i32) -> (i32, i32) {
    %c0_i32 = arith.constant 0 : i32
    %c0_i32_0 = arith.constant 0 : i32
    %c0_i32_1 = arith.constant 0 : i32
    return %c0_i32, %c0_i32_0 : i32, i32
  }
  func.func @transform_3(%arg0: i32, %arg1: i32, %arg2: i32) -> (i32, i32, i32) {
    %c1_i32 = arith.constant 1 : i32
    %0 = arith.muli %arg1, %c1_i32 : i32
    %1 = arith.addi %0, %arg2 : i32
    %c0_i32 = arith.constant 0 : i32
    %c0_i32_0 = arith.constant 0 : i32
    return %arg0, %c0_i32, %1 : i32, i32, i32
  }
  func.func @transform_4(%arg0: i32, %arg1: i32, %arg2: i32) -> (i32, i32, i32) {
    %c1_i32 = arith.constant 1 : i32
    %0 = arith.muli %arg1, %c1_i32 : i32
    %1 = arith.addi %0, %arg2 : i32
    %c0_i32 = arith.constant 0 : i32
    %c0_i32_0 = arith.constant 0 : i32
    return %arg0, %c0_i32, %1 : i32, i32, i32
  }
  func.func @transform_5(%arg0: i32, %arg1: i32, %arg2: i32) -> (i32, i32, i32) {
    %c1_i32 = arith.constant 1 : i32
    %0 = arith.muli %arg0, %c1_i32 : i32
    %1 = arith.addi %0, %arg1 : i32
    %c0_i32 = arith.constant 0 : i32
    %c0_i32_0 = arith.constant 0 : i32
    %c0_i32_1 = arith.constant 0 : i32
    return %1, %c0_i32, %c0_i32_0 : i32, i32, i32
  }
}

</mosaic_0001>

<bundles_post_ra>
// kernel: sliced_vector_quantize.1
= control target key start
LH: loop header
LB: loop body
LE: loop exit
PB: predicated region body
PF: predicated region fallthrough
CT: control target
= control target key end

     0   :  { %v415_v2 = vmov 0   ;;  %vm68_vm0 = vcmask 261120   ;;  %vm143_vm1 = vcmask 130048   ;;  %v138_v28 = vlaneseq  ;;  %s646_s3 = inlined_call_operand.vmem [shape: f32[1,32,16], index: 3, kind: input, shape index: {}]   ;;  %s647_s2 = inlined_call_operand.vmem [shape: f32[32,1], index: 2, kind: input, shape index: {}]   ;;  %s648_s0 = inlined_call_operand.vmem [shape: f32[32,32], index: 0, kind: input, shape index: {}]   ;;  %s649_s5 = inlined_call_operand.vmem [shape: f32[1,33,1], index: 5, kind: output, shape index: {1}]   ;;  %s650_s1 = inlined_call_operand.vmem [shape: f32[32,32], index: 1, kind: input, shape index: {}]   ;;  %s651_s4 = inlined_call_operand.vmem [shape: f32[1,32,16], index: 4, kind: output, shape index: {0}]  }
   0x1   :  { %v451_v0 = vld [vmem:[%s646_s3 + $0x18] sm:$0xff]  ;;  %v456_v1 = vld [vmem:[%s646_s3 + $0x10] sm:$0xff]  ;;  %414 = vset.pattern.permute.xlu1 %v415_v2  ;;  %413 = vset.pattern.permute.xlu0 %v415_v2  ;;  %v463_v3 = vld [vmem:[%s646_s3 + $0x8] sm:$0xff]  ;;  %vm306_vm9 = vcmask 7168   ;;  %v416_v61 = vmov 0.0  }
   0x2   :  { %93 = vmatpush.msra.mxu0 %v451_v0  ;;  %400 = vmatpush.msra.mxu2 %v451_v0  ;;  %v112_v4 = vld [vmem:[%s647_s2 + $0x10] sm:$0xff]  ;;  %v110_v5 = vld [vmem:[%s647_s2] sm:$0xff]  ;;  %v113_v9 = vld [vmem:[%s647_s2 + $0x18] sm:$0xff]  ;;  %v508_v35 = vshrl.u32 %v138_v28, 7  ;;  %309 = vst.msk [vmem:[%s649_s5 + $0x10] sm:$0xff] %vm306_vm9, %v416_v61 }
   0x3   :  { %v476_v6 = vld [vmem:[%s646_s3] sm:$0xff]  ;;  %126 = vperm.xlu1 %414, %v112_v4   ;;  %116 = vperm.xlu0 %413, %v110_v5   ;;  %v66_v8 = vld [vmem:[%s648_s0 + $0x10] sm:$0xff]  ;;  %v111_v10 = vld [vmem:[%s647_s2 + $0x8] sm:$0xff]  ;;  %307 = vst.msk [vmem:[%s649_s5] sm:$0xff] %vm306_vm9, %v416_v61 }
   0x4   :  { %94 = vmatpush.msra.mxu0 %v456_v1  ;;  %401 = vmatpush.msra.mxu2 %v456_v1  ;;  %v64_v7 = vld [vmem:[%s648_s0] sm:$0xff]  ;;  %v65_v11 = vld [vmem:[%s648_s0 + $0x8] sm:$0xff]  ;;  %v67_v12 = vld [vmem:[%s648_s0 + $0x18] sm:$0xff]  ;;  %v140_v40 = vadd.s32 8, %v508_v35  ;;  %v141_v49 = vadd.s32 16, %v508_v35  ;;  %v142_v50 = vadd.s32 24, %v508_v35 }
   0x5   :  { %308 = vst.msk [vmem:[%s649_s5 + $0x8] sm:$0xff] %vm306_vm9, %v416_v61 }
   0x6   :  { %95 = vmatpush.msra.mxu0 %v463_v3  ;;  %402 = vmatpush.msra.mxu2 %v463_v3  ;;  %310 = vst.msk [vmem:[%s649_s5 + $0x18] sm:$0xff] %vm306_vm9, %v416_v61 }
   0x8   :  { %96 = vmatpush.msra.mxu0 %v476_v6  ;;  %403 = vmatpush.msra.mxu2 %v476_v6 }
   0x9   :  { %384 = vmatmul.msk.f32.vlgmr.msra.gmra.mxu0 %vm68_vm0, %v64_v7  ;;  %386 = vmatmul.msk.f32.vlgmr.msra.gmra.mxu2 %vm68_vm0, %v66_v8 }
   0xb   :  { %131 = vperm.xlu1 %414, %v113_v9   ;;  %121 = vperm.xlu0 %413, %v111_v10  }
  0x11   :  { %385 = vmatmul.msk.f32.gmra.mxu0 %vm68_vm0, %v65_v11  ;;  %387 = vmatmul.msk.f32.gmra.mxu2 %vm68_vm0, %v67_v12  ;;  %v417_v12 = vmov 1.0  }
  0x75   :  { %v117_v13 = vpop.permute.xlu0 %116  ;;  %v127_v15 = vpop.permute.xlu1 %126 }
  0x7d   :  { %v122_v18 = vpop.permute.xlu0 %121  ;;  %v132_v25 = vpop.permute.xlu1 %131 }
  0x86   :  { %v98_v14 = vpop.f32.mrf.mxu0 }
  0x87   :  { %v134_v17 = vsub.f32 %v117_v13, %v98_v14 }
  0x89   :  { %v144_v21 = vsel %vm143_vm1, %v134_v17, inf }
  0x8c   :  { %v104_v16 = vpop.f32.mrf.mxu2 }
  0x8d   :  { %v136_v24 = vsub.f32 %v127_v15, %v104_v16 }
  0x8e   :  { %v101_v19 = vpop.f32.mrf.mxu0 }
  0x8f   :  { %v135_v20 = vsub.f32 %v122_v18, %v101_v19  ;;  %v153_v31 = vsel %vm143_vm1, %v136_v24, inf  ;;  %v218_v19 = vld [vmem:[%s650_s1 + $0x10] sm:$0xff] }
  0x91   :  { %v145_v22 = vsel %vm143_vm1, %v135_v20, inf }
  0x92   :  { %v146_v23 = vmin.f32 %v144_v21, %v145_v22  ;;  %v219_v21 = vld [vmem:[%s650_s1 + $0x18] sm:$0xff]  ;;  %v315_v22 = vld [vmem:[%s649_s5 + $0x10] sm:$0xff] }
  0x94   :  { %v147_v26 = vrot.slane %v146_v23, 4  ;;  %v107_v27 = vpop.f32.mrf.mxu2 }
  0x95   :  { %v137_v29 = vsub.f32 %v132_v25, %v107_v27 }
  0x96   :  { %v148_v30 = vmin.f32 %v146_v23, %v147_v26  ;;  %v314_v23 = vld [vmem:[%s649_s5 + $0x8] sm:$0xff] }
  0x97   :  { %v154_v32 = vsel %vm143_vm1, %v137_v29, inf }
  0x98   :  { %v149_v33 = vrot.slane %v148_v30, 2  ;;  %v155_v34 = vmin.f32 %v153_v31, %v154_v32 }
  0x9a   :  { %v150_v36 = vmin.f32 %v148_v30, %v149_v33  ;;  %v156_v37 = vrot.slane %v155_v34, 4 }
  0x9c   :  { %v151_v38 = vrot.slane %v150_v36, 1  ;;  %v157_v39 = vmin.f32 %v155_v34, %v156_v37 }
  0x9e   :  { %v152_v41 = vmin.f32 %v150_v36, %v151_v38  ;;  %v158_v42 = vrot.slane %v157_v39, 2 }
  0xa0   :  { %vm162_vm2 = vcmp.le.f32.partialorder %v134_v17, %v152_v41  ;;  %vm163_vm3 = vcmp.le.f32.partialorder %v135_v20, %v152_v41  ;;  %v159_v43 = vmin.f32 %v157_v39, %v158_v42  ;;  %v216_v17 = vld [vmem:[%s650_s1] sm:$0xff]  ;;  %v217_v20 = vld [vmem:[%s650_s1 + $0x8] sm:$0xff] }
  0xa1   :  { %v164_v44 = vsel %vm162_vm2, %v508_v35, 32  ;;  %v165_v45 = vsel %vm163_vm3, %v140_v40, 32 }
  0xa2   :  { %v166_v46 = vsel %vm143_vm1, %v164_v44, 2147483647  ;;  %v167_v47 = vsel %vm143_vm1, %v165_v45, 2147483647  ;;  %v160_v48 = vrot.slane %v159_v43, 1 }
  0xa3   :  { %vm168_vm4 = vcmp.lt.s32.totalorder %v166_v46, %v167_v47 }
  0xa4   :  { %v169_v51 = vsel %vm168_vm4, %v166_v46, %v167_v47  ;;  %v161_v52 = vmin.f32 %v159_v43, %v160_v48 }
  0xa5   :  { %v170_v53 = vrot.slane %v169_v51, 4 }
  0xa6   :  { %vm179_vm5 = vcmp.le.f32.partialorder %v136_v24, %v161_v52  ;;  %vm180_vm6 = vcmp.le.f32.partialorder %v137_v29, %v161_v52 }
  0xa7   :  { %vm171_vm7 = vcmp.lt.s32.totalorder %v169_v51, %v170_v53  ;;  %v181_v54 = vsel %vm179_vm5, %v141_v49, 32  ;;  %v182_v55 = vsel %vm180_vm6, %v142_v50, 32 }
  0xa8   :  { %v172_v56 = vsel %vm171_vm7, %v169_v51, %v170_v53  ;;  %v183_v57 = vsel %vm143_vm1, %v181_v54, 2147483647  ;;  %v184_v58 = vsel %vm143_vm1, %v182_v55, 2147483647  ;;  %v313_v51 = vld [vmem:[%s649_s5] sm:$0xff] }
  0xa9   :  { %v173_v59 = vrot.slane %v172_v56, 2  ;;  %vm185_vm8 = vcmp.lt.s32.totalorder %v183_v57, %v184_v58 }
  0xaa   :  { %v186_v60 = vsel %vm185_vm8, %v183_v57, %v184_v58  ;;  %v316_v57 = vld [vmem:[%s649_s5 + $0x18] sm:$0xff] }
  0xab   :  { %v187_v62 = vrot.slane %v186_v60, 4  ;;  %vm174_vm10 = vcmp.lt.s32.totalorder %v172_v56, %v173_v59 }
  0xac   :  { %v175_v63 = vsel %vm174_vm10, %v172_v56, %v173_v59 }
  0xad   :  { %vm188_vm11 = vcmp.lt.s32.totalorder %v186_v60, %v187_v62  ;;  %v176_v2 = vrot.slane %v175_v63, 1 }
  0xae   :  { %v189_v4 = vsel %vm188_vm11, %v186_v60, %v187_v62 }
  0xaf   :  { %v190_v5 = vrot.slane %v189_v4, 2  ;;  %vm177_vm12 = vcmp.lt.s32.totalorder %v175_v63, %v176_v2 }
  0xb0   :  { %v178_v9 = vsel %vm177_vm12, %v175_v63, %v176_v2 }
  0xb1   :  { %vm191_vm13 = vcmp.lt.s32.totalorder %v189_v4, %v190_v5  ;;  %vm199_vm15 = vcmp.eq.s32.totalorder %v142_v50, %v178_v9  ;;  %vm198_vm6 = vcmp.eq.s32.totalorder %v141_v49, %v178_v9  ;;  %vm197_vm8 = vcmp.eq.s32.totalorder %v140_v40, %v178_v9 }
  0xb2   :  { %v192_v7 = vsel %vm191_vm13, %v189_v4, %v190_v5  ;;  %vm196_vm12 = vcmp.eq.s32.totalorder %v508_v35, %v178_v9 }
  0xb3   :  { %v193_v8 = vrot.slane %v192_v7, 1 }
  0xb5   :  { %vm194_vm14 = vcmp.lt.s32.totalorder %v192_v7, %v193_v8 }
  0xb6   :  { %v195_v10 = vsel %vm194_vm14, %v192_v7, %v193_v8 }
  0xb7   :  { %vm203_vm2 = vcmp.eq.s32.totalorder %v142_v50, %v195_v10  ;;  %vm202_vm3 = vcmp.eq.s32.totalorder %v141_v49, %v195_v10  ;;  %vm201_vm4 = vcmp.eq.s32.totalorder %v140_v40, %v195_v10  ;;  %vm200_vm11 = vcmp.eq.s32.totalorder %v508_v35, %v195_v10 }
  0xb8   :  { %vm538_vm5 = vmor %vm199_vm15, %vm203_vm2 }
  0xb9   :  { %392 = vmatpush.msk.msra.mxu1 %vm538_vm5, %v417_v12  ;;  %404 = vmatpush.msk.msra.mxu3 %vm538_vm5, %v417_v12  ;;  %vm206_vm7 = vmor %vm198_vm6, %vm202_vm3  ;;  %v391_v46 = vsel %vm538_vm5, 1.0, %v416_v61 }
  0xba   :  { %v390_v13 = vsel %vm206_vm7, 1.0, %v416_v61  ;;  %vm205_vm10 = vmor %vm197_vm8, %vm201_vm4 }
  0xbb   :  { %393 = vmatpush.msk.msra.mxu1 %vm206_vm7, %v417_v12  ;;  %405 = vmatpush.msk.msra.mxu3 %vm206_vm7, %v417_v12  ;;  %v271_v14 = vsel %vm143_vm1, %v390_v13, 0.0  ;;  %v389_v15 = vsel %vm205_vm10, 1.0, %v416_v61  ;;  %vm555_vm13 = vmor %vm196_vm12, %vm200_vm11 }
  0xbc   :  { %272 = vadd.xlane.f32.xlu1 %v271_v14  ;;  %v268_v16 = vsel %vm143_vm1, %v389_v15, 0.0  ;;  %v388_v44 = vsel %vm555_vm13, 1.0, %v416_v61 }
  0xbd   :  { %269 = vadd.xlane.f32.xlu0 %v268_v16  ;;  %394 = vmatpush.msk.msra.mxu1 %vm205_vm10, %v417_v12  ;;  %v265_v45 = vsel %vm143_vm1, %v388_v44, 0.0 }
  0xbe   :  { %406 = vmatpush.msk.msra.mxu3 %vm205_vm10, %v417_v12 }
  0xbf   :  { %395 = vmatpush.msk.msra.mxu1 %vm555_vm13, %v417_v12 }
  0xc0   :  { %407 = vmatpush.msk.msra.mxu3 %vm555_vm13, %v417_v12  ;;  %396 = vmatmul.msk.f32.vlgmr.msra.gmra.mxu1 %vm68_vm0, %v216_v17 }
  0xc1   :  { %398 = vmatmul.msk.f32.vlgmr.msra.gmra.mxu3 %vm68_vm0, %v218_v19 }
  0xc8   :  { %397 = vmatmul.msk.f32.gmra.mxu1 %vm68_vm0, %v217_v20 }
  0xc9   :  { %399 = vmatmul.msk.f32.gmra.mxu3 %vm68_vm0, %v219_v21  ;;  %vm311_vm0 = vcmask 0  }
  0xca   :  { %312 = vst.msk [vmem:[%s649_s5 + $0x20] sm:$0x1] %vm311_vm0, %v416_v61 }
  0xd1   :  { %v317_v60 = vld [vmem:[%s649_s5 + $0x20] sm:$0x1] }
 0x12f   :  { %v273_v24 = vpop.xlane.xlu1 %272 }
 0x130   :  { %v320_v25 = vadd.f32 %v315_v22, %v273_v24  ;;  %v270_v26 = vpop.xlane.xlu0 %269 }
 0x131   :  { %v319_v27 = vadd.f32 %v314_v23, %v270_v26 }
 0x132   :  { %326 = vst.msk [vmem:[%s649_s5 + $0x10] sm:$0xff] %vm306_vm9, %v320_v25 }
 0x133   :  { %325 = vst.msk [vmem:[%s649_s5 + $0x8] sm:$0xff] %vm306_vm9, %v319_v27 }
 0x13d   :  { %v249_v28 = vpop.f32.mrf.mxu1 }
 0x13e   :  { %261 = vst.msk [vmem:[%s651_s4] sm:$0xff] %vm143_vm1, %v249_v28  ;;  %v277_v29 = vsub.f32 %v249_v28, %v476_v6 }
 0x140   :  { %v281_v33 = vmul.f32 %v277_v29, %v277_v29 }
 0x142   :  { %v285_v36 = vsel %vm143_vm1, %v281_v33, 0.0 }
 0x144   :  { %v255_v30 = vpop.f32.mrf.mxu3 }
 0x145   :  { %263 = vst.msk [vmem:[%s651_s4 + $0x10] sm:$0xff] %vm143_vm1, %v255_v30  ;;  %v252_v31 = vpop.f32.mrf.mxu1  ;;  %v279_v34 = vsub.f32 %v255_v30, %v456_v1 }
 0x146   :  { %262 = vst.msk [vmem:[%s651_s4 + $0x8] sm:$0xff] %vm143_vm1, %v252_v31  ;;  %v278_v32 = vsub.f32 %v252_v31, %v463_v3 }
 0x147   :  { %v283_v37 = vmul.f32 %v279_v34, %v279_v34 }
 0x148   :  { %v282_v35 = vmul.f32 %v278_v32, %v278_v32 }
 0x149   :  { %v288_v3 = vsel %vm143_vm1, %v283_v37, 0.0 }
 0x14a   :  { %v286_v6 = vsel %vm143_vm1, %v282_v35, 0.0 }
 0x14b   :  { %v287_v39 = vadd.f32 %v286_v6, %v285_v36 }
 0x14c   :  { %v258_v38 = vpop.f32.mrf.mxu3 }
 0x14d   :  { %264 = vst.msk [vmem:[%s651_s4 + $0x18] sm:$0xff] %vm143_vm1, %v258_v38  ;;  %v280_v40 = vsub.f32 %v258_v38, %v451_v0  ;;  %v289_v42 = vadd.f32 %v288_v3, %v287_v39  ;;  %v274_v0 = vsel %vm143_vm1, %v391_v46, 0.0 }
 0x14f   :  { %v284_v41 = vmul.f32 %v280_v40, %v280_v40 }
 0x151   :  { %v290_v1 = vsel %vm143_vm1, %v284_v41, 0.0 }
 0x152   :  { %v291_v43 = vadd.f32 %v290_v1, %v289_v42 }
 0x154   :  { %292 = vadd.xlane.f32.xlu2 %v291_v43 }
 0x15c   :  { %266 = vadd.xlane.f32.xlu2 %v265_v45 }
 0x164   :  { %275 = vadd.xlane.f32.xlu2 %v274_v0 }
 0x1c7   :  { %v293_v47 = vpop.xlane.xlu2 %292 }
 0x1c8   :  { %v294_v48 = vrot.slane %v293_v47, 4 }
 0x1ca   :  { %v295_v49 = vadd.f32 %v294_v48, %v293_v47 }
 0x1cc   :  { %v296_v50 = vrot.slane %v295_v49, 2 }
 0x1ce   :  { %v297_v52 = vadd.f32 %v296_v50, %v295_v49 }
 0x1cf   :  { %v267_v53 = vpop.xlane.xlu2 %266 }
 0x1d0   :  { %v318_v54 = vadd.f32 %v313_v51, %v267_v53  ;;  %v298_v55 = vrot.slane %v297_v52, 1 }
 0x1d2   :  { %324 = vst.msk [vmem:[%s649_s5] sm:$0xff] %vm306_vm9, %v318_v54  ;;  %v299_v56 = vadd.f32 %v298_v55, %v297_v52 }
 0x1d4   :  { %408 = vpush %v299_v56 }
 0x1d7   :  { %v276_v58 = vpop.xlane.xlu2 %275 }
 0x1d8   :  { %v321_v59 = vadd.f32 %v316_v57, %v276_v58 }
 0x1da   :  { %327 = vst.msk [vmem:[%s649_s5 + $0x18] sm:$0xff] %vm306_vm9, %v321_v59 }
 0x205   :  { %s409_s28 = spop %408 }
 0x206   :  { %v301_v62 = vstv %s409_s28 }
 0x207   :  { %v322_v63 = vadd.f32 %v317_v60, %v301_v62 }
 0x209   :  { %329 = vst.msk [vmem:[%s649_s5 + $0x20] sm:$0x1] %vm311_vm0, %v322_v63 }

</bundles_post_ra>
